<compile_context>
chip_gen: v7x
topology: tpu7x:2x2x1
jax: 0.10.0
libtpu: 0.0.40
codegen_flags: <defaults>
</compile_context>

<pallas_src>
import functools
import math

import jax
import jax.numpy as jnp
from jax.experimental import pallas as pl
from jax.experimental.pallas import tpu as pltpu


# ----------------------------------------------------------------------------
# Kernel: fused global-average-pool + 1x1 conv + sigmoid (native NCHW layout)
# ----------------------------------------------------------------------------
def _attention_kernel(x_ref, w_ref, o_ref, acc_ref, *, inv_hw, hw, tile,
                      needs_mask):
    # x_ref  : (1, C, tile)  one batch row, one spatial tile (HW on lanes)
    # w_ref  : (C, K)        1x1-conv weight, transposed
    # o_ref  : (1, 1, K)     sigmoid(mean(x) @ w) for this batch row
    # acc_ref: (1, C) f32    running spatial sum (persists across t steps)
    t = pl.program_id(1)

    @pl.when(t == 0)
    def _():
        acc_ref[...] = jnp.zeros_like(acc_ref)

    x = x_ref[...].astype(jnp.float32)                     # (1, C, tile)
    if needs_mask:
        # Last tile may extend past HW; zero the out-of-range lanes.
        col = jax.lax.broadcasted_iota(jnp.int32, x.shape, 2) + t * tile
        x = jnp.where(col < hw, x, 0.0)
    acc_ref[...] += jnp.sum(x, axis=2)                     # XLU lane reduce

    @pl.when(t == pl.num_programs(1) - 1)
    def _():
        pooled = acc_ref[...] * inv_hw                     # (1, C) mean
        att = jnp.dot(pooled, w_ref[...],                  # (1, K)
                      preferred_element_type=jnp.float32)
        o_ref[...] = jax.nn.sigmoid(att)[None].astype(o_ref.dtype)


def _pick_hw_tile(hw, c, dtype_bytes, target_block_bytes):
    """Spatial tile from a byte budget: multiple of 128 lanes, or full HW."""
    if hw <= 128:
        return hw
    tile = target_block_bytes // max(1, c * dtype_bytes)
    tile = max(128, (tile // 128) * 128)
    if tile >= hw:
        return hw           # whole spatial extent fits in one block
    return tile


# ----------------------------------------------------------------------------
# Wrapper (PyTorch Attention.forward semantics)
# ----------------------------------------------------------------------------
def attention_forward(x_nchw, weight, *, target_block_bytes=4 * 1024 * 1024):
    """x_nchw: (B, in_planes, H, W); weight: (K, in_planes[,1,1]) -> (B, K)."""
    B, C, H, W = x_nchw.shape
    w = weight.reshape(weight.shape[0], -1)                # (K, C), 1x1, no bias
    K = w.shape[0]
    assert w.shape[1] == C, "weight in_planes mismatch"
    hw = H * W

    # Native layout: free reshape only, no transpose, no dtype copy.
    x = x_nchw.reshape(B, C, hw)
    w_t = jnp.transpose(w, (1, 0)).astype(jnp.float32)     # (C, K), tiny

    dtype_bytes = jnp.dtype(x.dtype).itemsize
    tile = _pick_hw_tile(hw, C, dtype_bytes, target_block_bytes)
    n_t = (hw + tile - 1) // tile
    needs_mask = (hw % tile) != 0

    # VMEM budget: double-buffered input block + weight/out/acc + slack.
    block_bytes = C * tile * dtype_bytes
    vmem_limit = int(min(max(3 * block_bytes + (4 << 20), 16 << 20), 48 << 20))

    cost = pl.CostEstimate(
        flops=2 * B * C * hw + 2 * B * C * K,
        transcendentals=B * K,
        bytes_accessed=B * C * hw * dtype_bytes + C * K * 4 + B * K * 4,
    )

    kernel = functools.partial(
        _attention_kernel,
        inv_hw=1.0 / float(hw), hw=hw, tile=tile, needs_mask=needs_mask)

    out = pl.pallas_call(
        kernel,
        out_shape=jax.ShapeDtypeStruct((B, 1, K), jnp.float32),
        grid=(B, n_t),
        in_specs=[
            pl.BlockSpec((1, C, tile), lambda b, t: (b, 0, t)),
            pl.BlockSpec((C, K), lambda b, t: (0, 0)),
        ],
        out_specs=pl.BlockSpec((1, 1, K), lambda b, t: (b, 0, 0)),
        scratch_shapes=[pltpu.VMEM((1, C), jnp.float32)],
        compiler_params=pltpu.CompilerParams(
            # batch -> megacore-parallel on v7x; spatial tiles -> reduction
            dimension_semantics=("parallel", "arbitrary"),
            vmem_limit_bytes=vmem_limit,
        ),
        cost_estimate=cost,
    )(x, w_t)
    return out.reshape(B, K)


# Pure-JAX reference for correctness checking.
def attention_reference(x_nchw, weight):
    w = weight.reshape(weight.shape[0], -1).astype(jnp.float32)
    pooled = jnp.mean(x_nchw.astype(jnp.float32), axis=(2, 3))   # (B, C)
    return jax.nn.sigmoid(pooled @ w.T)


# ----------------------------------------------------------------------------
if __name__ == "__main__":
    key = jax.random.PRNGKey(0)
    kx, kw, kx2, kw2 = jax.random.split(key, 4)

    # --- Test 1: f32 input, 128-aligned spatial extent (single-tile path) ---
    B, C, H, W, K = 2, 64, 32, 32, 4
    x = jax.random.normal(kx, (B, C, H, W), jnp.float32)
    # kaiming_normal_(mode='fan_out', relu) for a 1x1 conv: std = sqrt(2 / K).
    weight = jax.random.normal(kw, (K, C, 1, 1), jnp.float32) * math.sqrt(2.0 / K)
    out = jax.block_until_ready(attention_forward(x, weight))
    ref = attention_reference(x, weight)
    assert out.shape == (B, K)
    assert bool(jnp.allclose(out, ref, atol=1e-5, rtol=1e-5)), (out, ref)

    # --- Test 2: non-128-divisible HW + forced multi-tile (masked last tile) --
    B2, C2, H2, W2 = 2, 8, 30, 30          # HW = 900 = 7*128 + 4
    x2 = jax.random.normal(kx2, (B2, C2, H2, W2), jnp.float32)
    weight2 = jax.random.normal(kw2, (K, C2, 1, 1), jnp.float32) * math.sqrt(2.0 / K)
    out2 = jax.block_until_ready(
        attention_forward(x2, weight2, target_block_bytes=4096))  # tile=128
    ref2 = attention_reference(x2, weight2)
    assert bool(jnp.allclose(out2, ref2, atol=1e-5, rtol=1e-5)), (out2, ref2)

    # --- Test 3: bf16 input streamed in native dtype (f32 accumulation) -----
    xb = x.astype(jnp.bfloat16)
    outb = jax.block_until_ready(attention_forward(xb, weight))
    refb = attention_reference(xb, weight)
    assert bool(jnp.allclose(outb, refb, atol=2e-2, rtol=2e-2)), (outb, refb)

    print("KERNEL_OK")
</pallas_src>

<mosaic_0001>
module attributes {stable_mosaic.version = 11 : i64} {
  func.func @_attention_kernel(%arg0: i32, %arg1: i32, %arg2: memref<1x64x1024xf32, #tpu.memory_space<vmem>>, %arg3: memref<64x4xf32, #tpu.memory_space<vmem>>, %arg4: memref<1x1x4xf32, #tpu.memory_space<vmem>>, %arg5: memref<1x64xf32, #tpu.memory_space<vmem>>) attributes {dimension_semantics = [#tpu.dimension_semantics<parallel>, #tpu.dimension_semantics<arbitrary>], iteration_bounds = array<i64: 2, 1>, scalar_prefetch = 0 : i64, scratch_operands = 1 : i64, tpu.core_type = #tpu.core_type<tc>, window_params = [{transform_indices = @transform_0, window_bounds = array<i64: 1, 64, 1024>}, {pipeline_mode = #tpu.pipeline_mode<synchronous>, transform_indices = @transform_1, window_bounds = array<i64: 64, 4>}, {transform_indices = @transform_2, window_bounds = array<i64: 1, 1, 4>}]} {
    %c0_i32 = arith.constant 0 : i32
    %0 = arith.cmpi eq, %arg1, %c0_i32 : i32
    %1 = arith.extui %0 : i1 to i32
    %c0_i32_0 = arith.constant 0 : i32
    %2 = arith.cmpi ne, %1, %c0_i32_0 : i32
    scf.if %2 {
      %cst_9 = arith.constant 0.000000e+00 : f32
      %11 = vector.broadcast %cst_9 : f32 to vector<1x64xf32>
      %c0_10 = arith.constant 0 : index
      %c0_11 = arith.constant 0 : index
      %12 = vector.load %arg5[%c0_10, %c0_11] : memref<1x64xf32, #tpu.memory_space<vmem>>, vector<1x64xf32>
      tpu.vector_store %arg5[%c0_10, %c0_11], %11 {strides = array<i32>} : memref<1x64xf32, #tpu.memory_space<vmem>>, vector<1x64xf32>,
    } else {
    }
    %c0 = arith.constant 0 : index
    %c0_1 = arith.constant 0 : index
    %c0_2 = arith.constant 0 : index
    %3 = vector.load %arg2[%c0, %c0_1, %c0_2] : memref<1x64x1024xf32, #tpu.memory_space<vmem>>, vector<1x64x1024xf32>
    %c0_3 = arith.constant 0 : index
    %c0_4 = arith.constant 0 : index
    %4 = vector.load %arg5[%c0_3, %c0_4] : memref<1x64xf32, #tpu.memory_space<vmem>>, vector<1x64xf32>
    %cst = arith.constant dense<0.000000e+00> : vector<1x64xf32>
    %5 = vector.multi_reduction <add>, %3, %cst [2] : vector<1x64x1024xf32> to vector<1x64xf32>
    %6 = arith.addf %4, %5 : vector<1x64xf32>
    %c0_5 = arith.constant 0 : index
    %c0_6 = arith.constant 0 : index
    %7 = vector.load %arg5[%c0_5, %c0_6] : memref<1x64xf32, #tpu.memory_space<vmem>>, vector<1x64xf32>
    tpu.vector_store %arg5[%c0_5, %c0_6], %6 {strides = array<i32>} : memref<1x64xf32, #tpu.memory_space<vmem>>, vector<1x64xf32>,
    %c0_i32_7 = arith.constant 0 : i32
    %8 = arith.cmpi eq, %arg1, %c0_i32_7 : i32
    %9 = arith.extui %8 : i1 to i32
    %c0_i32_8 = arith.constant 0 : i32
    %10 = arith.cmpi ne, %9, %c0_i32_8 : i32
    scf.if %10 {
      %c0_9 = arith.constant 0 : index
      %c0_10 = arith.constant 0 : index
      %11 = vector.load %arg5[%c0_9, %c0_10] : memref<1x64xf32, #tpu.memory_space<vmem>>, vector<1x64xf32>
      %cst_11 = arith.constant 9.765625E-4 : f32
      %12 = vector.broadcast %cst_11 : f32 to vector<1x64xf32>
      %13 = arith.mulf %11, %12 : vector<1x64xf32>
      %c0_12 = arith.constant 0 : index
      %c0_13 = arith.constant 0 : index
      %14 = vector.load %arg3[%c0_12, %c0_13] : memref<64x4xf32, #tpu.memory_space<vmem>>, vector<64x4xf32>
      %cst_14 = arith.constant dense<0.000000e+00> : vector<1x4xf32>
      %15 = tpu.matmul %13, %14, %cst_14 {dimension_numbers = #tpu.dot_dimension_numbers<[1], [0], [0], [1], [0, 0, 1, 1], [], []>} : vector<1x64xf32>, vector<64x4xf32>, vector<1x4xf32> -> vector<1x4xf32>
      %16 = arith.negf %15 : vector<1x4xf32>
      %17 = math.exp %16 : vector<1x4xf32>
      %cst_15 = arith.constant 1.000000e+00 : f32
      %18 = vector.broadcast %cst_15 : f32 to vector<1x4xf32>
      %19 = arith.addf %18, %17 : vector<1x4xf32>
      %20 = arith.divf %18, %19 : vector<1x4xf32>
      %21 = vector.shape_cast %20 : vector<1x4xf32> to vector<1x1x4xf32>
      %c0_16 = arith.constant 0 : index
      %c0_17 = arith.constant 0 : index
      %c0_18 = arith.constant 0 : index
      %22 = vector.load %arg4[%c0_16, %c0_17, %c0_18] : memref<1x1x4xf32, #tpu.memory_space<vmem>>, vector<1x1x4xf32>
      tpu.vector_store %arg4[%c0_16, %c0_17, %c0_18], %21 {strides = array<i32>} : memref<1x1x4xf32, #tpu.memory_space<vmem>>, vector<1x1x4xf32>,
    } else {
    }
    return
  }
  func.func @transform_0(%arg0: i32, %arg1: i32) -> (i32, i32, i32) {
    %c0_i32 = arith.constant 0 : i32
    %c0_i32_0 = arith.constant 0 : i32
    return %arg0, %c0_i32, %arg1 : i32, i32, i32
  }
  func.func @transform_1(%arg0: i32, %arg1: i32) -> (i32, i32) {
    %c0_i32 = arith.constant 0 : i32
    %c0_i32_0 = arith.constant 0 : i32
    %c0_i32_1 = arith.constant 0 : i32
    return %c0_i32, %c0_i32_0 : i32, i32
  }
  func.func @transform_2(%arg0: i32, %arg1: i32) -> (i32, i32, i32) {
    %c0_i32 = arith.constant 0 : i32
    %c0_i32_0 = arith.constant 0 : i32
    %c0_i32_1 = arith.constant 0 : i32
    return %arg0, %c0_i32, %c0_i32_0 : i32, i32, i32
  }
}

</mosaic_0001>

<bundles_post_ra>
// kernel: tpu_custom_call.1
= control target key start
LH: loop header
LB: loop body
LE: loop exit
PB: predicated region body
PF: predicated region fallthrough
CT: control target
= control target key end

     0   :  { %7 = vsyncpa [#allocation4], 0  ;;  %s1946_s0 = inlined_call_operand.hbm [shape: f32[2,64,1024], index: 0, kind: input, shape index: {}]   ;;  %s1947_s1 = inlined_call_operand.vmem [shape: f32[64,4], index: 1, kind: input, shape index: {}]   ;;  %s1948_s2 = inlined_call_operand.hbm [shape: f32[2,1,4], index: 2, kind: output, shape index: {}]  }
   0x1   :  { %9 = vsyncpa [#allocation4 + $0x1], 0 }
   0x2   :  { %10 = vsyncpa [#allocation5], 0 }
   0x3   :  { %12 = vsyncpa [#allocation5 + $0x1], 0  ;;  %s1527_s9 = smov 0   ;;  %s1529_s10 = smov 0  }
   0x4   :  { %s1531_s11 = smov 0   ;;  %s1533_s12 = smov 0  }
   0x5   :  { %s1535_s13 = smov 0   ;;  %s1537_s14 = smov 0  }
   0x6 LB: > { %s1259_s15 = sadd.s32 4294967295, %s1501_s14   ;;  %s1260_s16 = sadd.s32 4294967294, %s1501_s14   ;;  %s1501_s14 = sphi %s1537_s14, %s18_s14   ;;  %s1497_s13 = sphi %s1535_s13, %s1963_s13   ;;  %s1493_s12 = sphi %s1533_s12, %s1962_s12   ;;  %s1489_s11 = sphi %s1531_s11, %s1961_s11   ;;  %s1485_s10 = sphi %s1529_s10, %s1960_s10   ;;  %s1481_s9 = sphi %s1527_s9, %s1959_s9  }
   0x7   : > { %s30_s17 = sadd.s32 1, %s1497_s13  ;;  %s39_s18 = sadd.s32 1, %s1489_s11 }
   0x8   : > { %p32_p0 = scmp.ge.s32.totalorder %s30_s17, 2  ;;  %p46_p1 = scmp.ne.s32.totalorder %s1489_s11, %s1485_s10 }
   0x9   : > { %p47_p2 = scmp.eq.s32.totalorder %s1501_s14, 0  ;;  %p52_p3 = scmp.ne.s32.totalorder %s1485_s10, %s1481_s9 }
   0xa   : > { %s1965_s17 = smov (%p32_p0, %s30_s17), 0  ;;  %p53_p5 = scmp.eq.s32.totalorder %s1259_s15, 0 }
   0xb   : > { %p1568_p4 = por %p47_p2, %p46_p1  ;;  %s34_s20 = ssub.s32 %s1497_s13, %s1965_s17 }
   0xc   : > { %p97_p6 = scmp.eq.s32.totalorder %s1259_s15, 1  ;;  %p37_p7 = scmp.eq.s32.totalorder %s34_s20, 0 }
   0xd   : > { %p1574_p8 = por %p53_p5, %p52_p3  ;;  %p103_p10 = scmp.eq.s32.totalorder %s1260_s16, 1 }
   0xe   : > { %p1578_p9 = por %p97_p6, %p46_p1  ;;  %p1326_p13 = scmp.lt.s32.totalorder %s1501_s14, 2 }
   0xf   : > { %s1583_s23 = scalar_select %p37_p7, %s1489_s11, %s39_s18  }
  0x10   : > { %s1952_s22 = scalar_select %p1578_p9, 1, 0 }
  0x11   : > { %p1585_p11 = por %p103_p10, %p52_p3  ;;  %s126_s25 = sand.u32 1, %s1489_s11  }
  0x12   : > { %s1263_s26 = sshll.u32 %s126_s25, 9  ;;  %s1273_s27 = sshll.u32 %s1497_s13, 13 }
  0x13   : > { %s1953_s24 = scalar_select %p1585_p11, 1, 0 }
  0x14   : > { %s1596_s30 = scalar_lea.hbm %s1946_s0, %s1273_s27  ;;  %s130_s3 = scalar_lea.vmem [#allocation3], %s1263_s26 }
  0x15   : > { %s139_s4 = sshll.u32 %s130_s3, 4  ;;  %p1602_p0 = pnand %p1326_p13, %p1568_p4  ;;  %s1598_s4 = int_to_ptr.vmem [resolvable:$true] %s139_s4 }
  0x16   : > { %s1607_s6 = scalar_lea.sflag [#allocation4], %s126_s25  ;;  %s1389_s7 = scalar_lea.hbm %s1596_s30, 8192 }
  0x17   : > { %p1390_p2 = scmp.ne.s32.totalorder %s1596_s30, %s1389_s7  ;;  %p1391_p3 = pneg %p1602_p0 }
  0x18   : > { %s1394_s16 = scalar_lea.hbm %s1946_s0, 16384  ;;  %p1395_p4 = scmp.lt.u32.totalorder %s1596_s30, %s1946_s0 }
  0x19   : > { %p1392_p5 = pnand %p1391_p3, %p1390_p2  ;;  %p1396_p7 = scmp.lt.u32.totalorder %s1394_s16, %s1389_s7 }
  0x1a   : > { %p1398_p13 = scmp.lt.u32.totalorder %s1389_s7, %s1596_s30 }
  0x1b   : > { %p1393_p6 = pneg %p1392_p5  ;;  %p1397_p10 = por %p1396_p7, %p1395_p4 }
  0x1d   : > { %p1399_p12 = por %p1398_p13, %p1397_p10 }
  0x1f   : > { %p1400_p1 = pnand %p1399_p12, %p1393_p6 }
  0x21   : > { %1403 = shalt.err (!%p1400_p1)
}
  0x22   : > { %s1404_s20 = scalar_lea.vmem %s1598_s4, 8192  ;;  %s1503_s25 = smov [#allocation3]  }
  0x23   : > { %p1405_p2 = scmp.ne.s32.totalorder %s1598_s4, %s1404_s20  ;;  %s1409_s26 = sshll.u32 %s1503_s25, 4  ;;  %s1410_s26 = int_to_ptr.vmem [resolvable:$false] %s1409_s26 }
  0x24   : > { %s1411_s27 = scalar_lea.vmem %s1410_s26, 16384  ;;  %p1412_p9 = scmp.lt.s32.totalorder %s1598_s4, %s1410_s26 }
  0x25   : > { %p1407_p5 = pnand %p1405_p2, %p1391_p3  ;;  %p1413_p4 = scmp.lt.s32.totalorder %s1411_s27, %s1404_s20 }
  0x27   : > { %p1408_p11 = pneg %p1407_p5  ;;  %p1414_p7 = por %p1413_p4, %p1412_p9 }
  0x29   : > { %p1415_p10 = pnand %p1414_p7, %p1408_p11 }
  0x2b   : > { %1418 = shalt.err (!%p1415_p10)
}
  0x2c   : > { %s1504_s28 = smov 1024   ;;  %s1505_s29 = smov 64  }
  0x2d   : > { %1321 = dma.hbm_to_vmem [thread:$0]  (!%p1602_p0), %s1596_s30, 8192, %s1598_s4, %s1607_s6, %s1504_s28, %s1504_s28, %s1505_s29  }
  0x2e   : > { %p147_p12 = scmp.lt.s32.totalorder %s1501_s14, 3  ;;  %p1955_p1 = scmp.ge.s32.totalorder %s1501_s14, 1 }
  0x30   : > { %p148_p3 = pnand %p1955_p1, %p147_p12 }
  0x31   : > { %s1639_s3 = sand.u32 (!%p148_p3), 1, %s1485_s10  }
  0x32   : > { %151 = sbr.rel (%p148_p3) target bundleno = 664 (0x298), region = 28  ;;  %s1267_s7 = sshll.u32 (!%p148_p3), %s1639_s3, 9 }
  0x33   : > { %s154_s8 = scalar_lea.sflag (!%p148_p3), [#allocation4], %s1639_s3  ;;  %s1643_s15 = scalar_lea.vmem (!%p148_p3), [#allocation3], %s1267_s7 }
  0x39   : > { %1472 = dma.done.wait (%p1574_p8), %s154_s8, 8192  }
  0x3a   : > { %1474 = vsyncadd (%p1574_p8), %s154_s8, 4294959104  ;;  %v184_v0 = vld [vmem:[%s1643_s15] sm:$0xff]  ;;  %v185_v1 = vld [vmem:[%s1643_s15 + $0x8] sm:$0xff]  ;;  %vm182_vm0 = vcmask 516096   ;;  %vm1510_vm1 = vmmov 0   ;;  %vm1012_vm2 = vcmask 130112  }
  0x3b   : > { %v186_v2 = vld [vmem:[%s1643_s15 + $0x10] sm:$0xff]  ;;  %v249_v3 = vadd.f32 %v185_v1, %v184_v0  ;;  %v187_v4 = vld [vmem:[%s1643_s15 + $0x18] sm:$0xff]  ;;  %v192_v5 = vld [vmem:[%s1643_s15 + $0x40] sm:$0xff]  ;;  %vm1019_vm3 = vcmask 195712   ;;  %vm1026_vm4 = vcmask 261312   ;;  %vm1033_vm5 = vcmask 326912  }
  0x3c   : > { %v193_v7 = vld [vmem:[%s1643_s15 + $0x48] sm:$0xff]  ;;  %v194_v8 = vld [vmem:[%s1643_s15 + $0x50] sm:$0xff]  ;;  %v188_v9 = vld [vmem:[%s1643_s15 + $0x20] sm:$0xff]  ;;  %vm1040_vm6 = vcmask 392512   ;;  %vm1047_vm7 = vcmask 458112   ;;  %vm1054_vm8 = vcmask 523712  }
  0x3d   : > { %v250_v6 = vadd.f32 %v249_v3, %v186_v2  ;;  %v258_v10 = vadd.f32 %v193_v7, %v192_v5  ;;  %v195_v12 = vld [vmem:[%s1643_s15 + $0x58] sm:$0xff]  ;;  %v200_v13 = vld [vmem:[%s1643_s15 + $0x80] sm:$0xff]  ;;  %v201_v14 = vld [vmem:[%s1643_s15 + $0x88] sm:$0xff]  ;;  %vm1087_vm9 = vcmask 523264   ;;  %s176_s21 = scalar_lea.vmem [#allocation6], %s1639_s3  ;;  %vm1167_vm10 = vcmask 24576  }
  0x3e   : > { %v189_v15 = vld [vmem:[%s1643_s15 + $0x28] sm:$0xff]  ;;  %v202_v17 = vld [vmem:[%s1643_s15 + $0x90] sm:$0xff]  ;;  %v267_v18 = vadd.f32 %v201_v14, %v200_v13  ;;  %v196_v21 = vld [vmem:[%s1643_s15 + $0x60] sm:$0xff]  ;;  %s1182_s30 = sshll.u32 %s176_s21, 4  ;;  %s1170_s16 = scalar_lea.sflag [#allocation5], %s1639_s3  ;;  %s1899_s30 = int_to_ptr.vmem [resolvable:$true] %s1182_s30 }
  0x3f   : > { %v251_v11 = vadd.f32 %v250_v6, %v187_v4  ;;  %v259_v16 = vadd.f32 %v258_v10, %v194_v8  ;;  %v190_v19 = vld [vmem:[%s1643_s15 + $0x30] sm:$0xff]  ;;  %v203_v22 = vld [vmem:[%s1643_s15 + $0x98] sm:$0xff]  ;;  %v208_v25 = vld [vmem:[%s1643_s15 + $0xc0] sm:$0xff]  ;;  %s1419_s18 = scalar_lea.vmem %s1899_s30, 16  ;;  %p1956_p9 = scmp.ne.s32.totalorder %s1952_s22, 0 }
  0x40   : > { %v268_v24 = vadd.f32 %v267_v18, %v202_v17  ;;  %v209_v26 = vld [vmem:[%s1643_s15 + $0xc8] sm:$0xff]  ;;  %v210_v27 = vld [vmem:[%s1643_s15 + $0xd0] sm:$0xff]  ;;  %v191_v28 = vld [vmem:[%s1643_s15 + $0x38] sm:$0xff]  ;;  %p1420_p8 = scmp.ne.s32.totalorder %s1899_s30, %s1419_s18 }
  0x41   : > { %v252_v20 = vadd.f32 %v251_v11, %v188_v9  ;;  %v260_v23 = vadd.f32 %v259_v16, %v195_v12  ;;  %v197_v30 = vld [vmem:[%s1643_s15 + $0x68] sm:$0xff]  ;;  %v204_v31 = vld [vmem:[%s1643_s15 + $0xa0] sm:$0xff]  ;;  %v276_v32 = vadd.f32 %v209_v26, %v208_v25  ;;  %v198_v33 = vld [vmem:[%s1643_s15 + $0x70] sm:$0xff] }
  0x42   : > { %v269_v35 = vadd.f32 %v268_v24, %v203_v22  ;;  %v211_v36 = vld [vmem:[%s1643_s15 + $0xd8] sm:$0xff]  ;;  %v216_v37 = vld [vmem:[%s1643_s15 + $0x100] sm:$0xff]  ;;  %v205_v39 = vld [vmem:[%s1643_s15 + $0xa8] sm:$0xff]  ;;  %p1421_p11 = pnand %p1420_p8, %p1956_p9 }
  0x43   : > { %v253_v29 = vadd.f32 %v252_v20, %v189_v15  ;;  %v261_v34 = vadd.f32 %v260_v23, %v196_v21  ;;  %v277_v40 = vadd.f32 %v276_v32, %v210_v27  ;;  %v217_v41 = vld [vmem:[%s1643_s15 + $0x108] sm:$0xff]  ;;  %v218_v42 = vld [vmem:[%s1643_s15 + $0x110] sm:$0xff]  ;;  %v199_v43 = vld [vmem:[%s1643_s15 + $0x78] sm:$0xff] }
  0x44   : > { %v206_v45 = vld [vmem:[%s1643_s15 + $0xb0] sm:$0xff]  ;;  %v270_v46 = vadd.f32 %v269_v35, %v204_v31  ;;  %v212_v47 = vld [vmem:[%s1643_s15 + $0xe0] sm:$0xff]  ;;  %v285_v48 = vadd.f32 %v217_v41, %v216_v37  ;;  %v219_v51 = vld [vmem:[%s1643_s15 + $0x118] sm:$0xff]  ;;  %p1422_p0 = pneg %p1421_p11 }
  0x45   : > { %v254_v38 = vadd.f32 %v253_v29, %v190_v19  ;;  %v262_v44 = vadd.f32 %v261_v34, %v197_v30  ;;  %v278_v50 = vadd.f32 %v277_v40, %v211_v36  ;;  %v224_v52 = vld [vmem:[%s1643_s15 + $0x140] sm:$0xff]  ;;  %v225_v53 = vld [vmem:[%s1643_s15 + $0x148] sm:$0xff]  ;;  %v207_v55 = vld [vmem:[%s1643_s15 + $0xb8] sm:$0xff] }
  0x46   : > { %v271_v56 = vadd.f32 %v270_v46, %v205_v39  ;;  %v213_v57 = vld [vmem:[%s1643_s15 + $0xe8] sm:$0xff]  ;;  %v286_v58 = vadd.f32 %v285_v48, %v218_v42  ;;  %v226_v59 = vld [vmem:[%s1643_s15 + $0x150] sm:$0xff]  ;;  %v294_v60 = vadd.f32 %v225_v53, %v224_v52  ;;  %v220_v63 = vld [vmem:[%s1643_s15 + $0x120] sm:$0xff] }
  0x47   : > { %v255_v49 = vadd.f32 %v254_v38, %v191_v28  ;;  %v263_v54 = vadd.f32 %v262_v44, %v198_v33  ;;  %v214_v61 = vld [vmem:[%s1643_s15 + $0xf0] sm:$0xff]  ;;  %v279_v62 = vadd.f32 %v278_v50, %v212_v47  ;;  %v227_v0 = vld [vmem:[%s1643_s15 + $0x158] sm:$0xff]  ;;  %v232_v5 = vld [vmem:[%s1643_s15 + $0x180] sm:$0xff] }
  0x48   : > { %v272_v2 = vadd.f32 %v271_v56, %v206_v45  ;;  %v287_v3 = vadd.f32 %v286_v58, %v219_v51  ;;  %v295_v4 = vadd.f32 %v294_v60, %v226_v59  ;;  %v233_v6 = vld [vmem:[%s1643_s15 + $0x188] sm:$0xff]  ;;  %v234_v7 = vld [vmem:[%s1643_s15 + $0x190] sm:$0xff]  ;;  %v215_v8 = vld [vmem:[%s1643_s15 + $0xf8] sm:$0xff]  ;;  %v1506_v56 = vmov 0  }
  0x49   : > { %256 = vadd.xlane.f32.xlu0 %v255_v49  ;;  %v264_v1 = vadd.f32 %v263_v54, %v199_v43  ;;  %v280_v9 = vadd.f32 %v279_v62, %v213_v57  ;;  %v221_v10 = vld [vmem:[%s1643_s15 + $0x128] sm:$0xff]  ;;  %v228_v11 = vld [vmem:[%s1643_s15 + $0x160] sm:$0xff]  ;;  %v303_v12 = vadd.f32 %v233_v6, %v232_v5  ;;  %v222_v14 = vld [vmem:[%s1643_s15 + $0x130] sm:$0xff]  ;;  %1384 = vset.pattern.permute.xlu1 %v1506_v56  ;;  %v329_v57 = vlaneseq }
  0x4a   : > { %v273_v13 = vadd.f32 %v272_v2, %v207_v55  ;;  %v288_v15 = vadd.f32 %v287_v3, %v220_v63  ;;  %v296_v16 = vadd.f32 %v295_v4, %v227_v0  ;;  %v235_v17 = vld [vmem:[%s1643_s15 + $0x198] sm:$0xff]  ;;  %v240_v18 = vld [vmem:[%s1643_s15 + $0x1c0] sm:$0xff]  ;;  %v229_v20 = vld [vmem:[%s1643_s15 + $0x168] sm:$0xff]  ;;  %1383 = vset.pattern.permute.xlu0 %v1506_v56  ;;  %v1507_v58 = vmov 1966171168  }
  0x4b   : > { %v281_v19 = vadd.f32 %v280_v9, %v214_v61  ;;  %v304_v21 = vadd.f32 %v303_v12, %v234_v7  ;;  %v241_v22 = vld [vmem:[%s1643_s15 + $0x1c8] sm:$0xff]  ;;  %v242_v23 = vld [vmem:[%s1643_s15 + $0x1d0] sm:$0xff]  ;;  %v236_v26 = vld [vmem:[%s1643_s15 + $0x1a0] sm:$0xff]  ;;  %v590_v59 = vunpack.c.l.s4 %v1507_v58  ;;  %v1714_v60 = vshrl.u32 %v329_v57, 7 }
  0x4c   : > { %274 = vadd.xlane.f32.xlu1 %v273_v13  ;;  %v289_v24 = vadd.f32 %v288_v15, %v221_v10  ;;  %v297_v25 = vadd.f32 %v296_v16, %v228_v11  ;;  %v312_v27 = vadd.f32 %v241_v22, %v240_v18  ;;  %v223_v29 = vld [vmem:[%s1643_s15 + $0x138] sm:$0xff]  ;;  %v230_v30 = vld [vmem:[%s1643_s15 + $0x170] sm:$0xff]  ;;  %v237_v35 = vld [vmem:[%s1643_s15 + $0x1a8] sm:$0xff] }
  0x4d   : > { %265 = vadd.xlane.f32.xlu0 %v264_v1  ;;  %v282_v28 = vadd.f32 %v281_v19, %v215_v8  ;;  %v305_v31 = vadd.f32 %v304_v21, %v235_v17  ;;  %v243_v32 = vld [vmem:[%s1643_s15 + $0x1d8] sm:$0xff]  ;;  %v244_v39 = vld [vmem:[%s1643_s15 + $0x1e0] sm:$0xff]  ;;  %v238_v42 = vld [vmem:[%s1643_s15 + $0x1b0] sm:$0xff]  ;;  %v591_v61 = vunpack.c.0.s8 %v590_v59  ;;  %v1717_v62 = vsub.s32 0, %v1714_v60 }
  0x4e   : > { %v290_v33 = vadd.f32 %v289_v24, %v222_v14  ;;  %v298_v34 = vadd.f32 %v297_v25, %v229_v20  ;;  %v313_v36 = vadd.f32 %v312_v27, %v242_v23  ;;  %v231_v37 = vld [vmem:[%s1643_s15 + $0x178] sm:$0xff]  ;;  %v245_v45 = vld [vmem:[%s1643_s15 + $0x1e8] sm:$0xff]  ;;  %v246_v50 = vld [vmem:[%s1643_s15 + $0x1f0] sm:$0xff]  ;;  %v1720_v63 = vsub.s32 1, %v1714_v60 }
  0x4f   : > { %v306_v38 = vadd.f32 %v305_v31, %v236_v26  ;;  %v239_v47 = vld [vmem:[%s1643_s15 + $0x1b8] sm:$0xff]  ;;  %v1723_v0 = vsub.s32 2, %v1714_v60  ;;  %v1726_v1 = vsub.s32 3, %v1714_v60  ;;  %v1729_v2 = vsub.s32 4, %v1714_v60 }
  0x50   : > { %283 = vadd.xlane.f32.xlu1 %v282_v28  ;;  %v291_v40 = vadd.f32 %v290_v33, %v223_v29  ;;  %v299_v41 = vadd.f32 %v298_v34, %v230_v30  ;;  %v314_v43 = vadd.f32 %v313_v36, %v243_v32  ;;  %v247_v53 = vld [vmem:[%s1643_s15 + $0x1f8] sm:$0xff]  ;;  %v1732_v3 = vsub.s32 5, %v1714_v60  ;;  %s1270_s15 = sshll.u32 %s1493_s12, 4  ;;  %s1511_s12 = smov [#allocation6]  }
  0x51   : > { %v307_v44 = vadd.f32 %v306_v38, %v237_v35  ;;  %v1735_v4 = vsub.s32 6, %v1714_v60  ;;  %v1738_v5 = vsub.s32 7, %v1714_v60  ;;  %v1741_v7 = vsub.s32 %v591_v61, %v1714_v60  ;;  %s1897_s6 = scalar_lea.hbm %s1948_s2, %s1270_s15  ;;  %s1423_s19 = sshll.u32 %s1511_s12, 4  ;;  %s1424_s19 = int_to_ptr.vmem [resolvable:$false] %s1423_s19 }
  0x52   : > { %292 = vadd.xlane.f32.xlu0 %v291_v40  ;;  %v300_v46 = vadd.f32 %v299_v41, %v231_v37  ;;  %v315_v48 = vadd.f32 %v314_v43, %v244_v39  ;;  %s1425_s20 = scalar_lea.vmem %s1424_s19, 32  ;;  %p1426_p6 = scmp.lt.s32.totalorder %s1899_s30, %s1424_s19 }
  0x53   : > { %v308_v49 = vadd.f32 %v307_v44, %v238_v42  ;;  %p1427_p13 = scmp.lt.s32.totalorder %s1425_s20, %s1419_s18 }
  0x54   : > { %301 = vadd.xlane.f32.xlu1 %v300_v46  ;;  %v316_v51 = vadd.f32 %v315_v48, %v245_v45 }
  0x55   : > { %v309_v52 = vadd.f32 %v308_v49, %v239_v47  ;;  %p1428_p2 = por %p1427_p13, %p1426_p6 }
  0x56   : > { %v317_v54 = vadd.f32 %v316_v51, %v246_v50 }
  0x57   : > { %310 = vadd.xlane.f32.xlu0 %v309_v52  ;;  %p1429_p5 = pnand %p1428_p2, %p1422_p0 }
  0x58   : > { %v318_v55 = vadd.f32 %v317_v54, %v247_v53 }
  0x5a   : > { %319 = vadd.xlane.f32.xlu1 %v318_v55 }
  0xd6   : > { %v257_v6 = vpop.xlane.xlu0 %256 }
  0xd7   : > { %v332_v8 = vrot.slane %v257_v6, %v1717_v62  ;;  %v336_v9 = vrot.slane %v257_v6, %v1720_v63  ;;  %v340_v10 = vrot.slane %v257_v6, %v1723_v0  ;;  %v344_v11 = vrot.slane %v257_v6, %v1726_v1 }
  0xd8   : > { %v348_v12 = vrot.slane %v257_v6, %v1729_v2  ;;  %v352_v13 = vrot.slane %v257_v6, %v1732_v3  ;;  %v356_v14 = vrot.slane %v257_v6, %v1735_v4  ;;  %v360_v15 = vrot.slane %v257_v6, %v1738_v5 }
  0xd9   : > { %v585_v16 = vcombine.low %v332_v8, %v336_v9  ;;  %v586_v17 = vcombine.low %v340_v10, %v344_v11  ;;  %v275_v21 = vpop.xlane.xlu1 %274 }
  0xda   : > { %v266_v18 = vpop.xlane.xlu0 %265  ;;  %v587_v19 = vcombine.low %v348_v12, %v352_v13  ;;  %v588_v20 = vcombine.low %v356_v14, %v360_v15  ;;  %v396_v40 = vrot.slane %v275_v21, %v1717_v62  ;;  %v400_v41 = vrot.slane %v275_v21, %v1720_v63 }
  0xdb   : > { %v595_v22 = vrot.slane %v585_v16, %v1741_v7  ;;  %v602_v23 = vrot.slane %v586_v17, %v1741_v7  ;;  %v364_v24 = vrot.slane %v266_v18, %v1717_v62  ;;  %v368_v25 = vrot.slane %v266_v18, %v1720_v63 }
  0xdc   : > { %v609_v26 = vrot.slane %v587_v19, %v1741_v7  ;;  %v616_v27 = vrot.slane %v588_v20, %v1741_v7  ;;  %v372_v28 = vrot.slane %v266_v18, %v1723_v0  ;;  %v376_v29 = vrot.slane %v266_v18, %v1726_v1 }
  0xdd   : > { %v617_v30 = vcombine.low %v595_v22, %v602_v23  ;;  %v380_v31 = vrot.slane %v266_v18, %v1729_v2  ;;  %v384_v32 = vrot.slane %v266_v18, %v1732_v3  ;;  %v388_v33 = vrot.slane %v266_v18, %v1735_v4  ;;  %v284_v46 = vpop.xlane.xlu1 %283 }
  0xde   : > { %v618_v34 = vcombine.low %v609_v26, %v616_v27  ;;  %v392_v35 = vrot.slane %v266_v18, %v1738_v5  ;;  %v634_v36 = vcombine.low %v364_v24, %v368_v25  ;;  %v635_v37 = vcombine.low %v372_v28, %v376_v29 }
  0xdf   : > { %v625_v38 = vrot.slane %v617_v30, %v1741_v7  ;;  %v636_v39 = vcombine.low %v380_v31, %v384_v32  ;;  %v404_v48 = vrot.slane %v275_v21, %v1723_v0  ;;  %v408_v49 = vrot.slane %v275_v21, %v1726_v1  ;;  %v293_v18 = vpop.xlane.xlu0 %292 }
  0xe0   : > { %v632_v42 = vrot.slane %v618_v34, %v1741_v7  ;;  %v637_v43 = vcombine.low %v388_v33, %v392_v35  ;;  %v644_v44 = vrot.slane %v634_v36, %v1741_v7  ;;  %v651_v45 = vrot.slane %v635_v37, %v1741_v7 }
  0xe1   : > { %v658_v47 = vrot.slane %v636_v39, %v1741_v7  ;;  %v412_v50 = vrot.slane %v275_v21, %v1729_v2  ;;  %v416_v54 = vrot.slane %v275_v21, %v1732_v3  ;;  %v420_v55 = vrot.slane %v275_v21, %v1735_v4  ;;  %v302_v39 = vpop.xlane.xlu1 %301 }
  0xe2   : > { %v633_v51 = vcombine.low %v625_v38, %v632_v42  ;;  %v665_v52 = vrot.slane %v637_v43, %v1741_v7  ;;  %v666_v53 = vcombine.low %v644_v44, %v651_v45  ;;  %v424_v56 = vrot.slane %v275_v21, %v1738_v5 }
  0xe3   : > { %v683_v58 = vcombine.low %v396_v40, %v400_v41  ;;  %v684_v59 = vcombine.low %v404_v48, %v408_v49  ;;  %v685_v8 = vcombine.low %v412_v50, %v416_v54  ;;  %v428_v9 = vrot.slane %v284_v46, %v1717_v62 }
  0xe4   : > { %978 = vperm.xlu0 %1383, %v633_v51   ;;  %v667_v61 = vcombine.low %v658_v47, %v665_v52  ;;  %v674_v6 = vrot.slane %v666_v53, %v1741_v7  ;;  %v686_v10 = vcombine.low %v420_v55, %v424_v56  ;;  %v432_v13 = vrot.slane %v284_v46, %v1720_v63 }
  0xe5   : > { %v693_v11 = vrot.slane %v683_v58, %v1741_v7  ;;  %v700_v12 = vrot.slane %v684_v59, %v1741_v7  ;;  %v707_v15 = vrot.slane %v685_v8, %v1741_v7  ;;  %v436_v16 = vrot.slane %v284_v46, %v1723_v0 }
  0xe6   : > { %v681_v14 = vrot.slane %v667_v61, %v1741_v7  ;;  %v440_v17 = vrot.slane %v284_v46, %v1726_v1  ;;  %v714_v19 = vrot.slane %v686_v10, %v1741_v7  ;;  %v444_v21 = vrot.slane %v284_v46, %v1729_v2 }
  0xe7   : > { %v715_v20 = vcombine.low %v693_v11, %v700_v12  ;;  %v448_v22 = vrot.slane %v284_v46, %v1732_v3  ;;  %v452_v24 = vrot.slane %v284_v46, %v1735_v4  ;;  %v456_v25 = vrot.slane %v284_v46, %v1738_v5 }
  0xe8   : > { %v682_v23 = vcombine.low %v674_v6, %v681_v14  ;;  %v732_v26 = vcombine.low %v428_v9, %v432_v13  ;;  %v716_v27 = vcombine.low %v707_v15, %v714_v19  ;;  %v733_v29 = vcombine.low %v436_v16, %v440_v17  ;;  %v311_v6 = vpop.xlane.xlu0 %310 }
  0xe9   : > { %v723_v28 = vrot.slane %v715_v20, %v1741_v7  ;;  %v734_v30 = vcombine.low %v444_v21, %v448_v22  ;;  %v735_v31 = vcombine.low %v452_v24, %v456_v25  ;;  %v460_v33 = vrot.slane %v293_v18, %v1717_v62 }
  0xea   : > { %981 = vperm.xlu1 %1384, %v682_v23   ;;  %v742_v32 = vrot.slane %v732_v26, %v1741_v7  ;;  %v464_v34 = vrot.slane %v293_v18, %v1720_v63  ;;  %v730_v35 = vrot.slane %v716_v27, %v1741_v7  ;;  %v749_v36 = vrot.slane %v733_v29, %v1741_v7 }
  0xeb   : > { %v756_v37 = vrot.slane %v734_v30, %v1741_v7  ;;  %v468_v38 = vrot.slane %v293_v18, %v1723_v0  ;;  %v763_v40 = vrot.slane %v735_v31, %v1741_v7  ;;  %v472_v41 = vrot.slane %v293_v18, %v1726_v1 }
  0xec   : > { %v476_v42 = vrot.slane %v293_v18, %v1729_v2  ;;  %v480_v43 = vrot.slane %v293_v18, %v1732_v3  ;;  %v731_v44 = vcombine.low %v723_v28, %v730_v35  ;;  %v764_v45 = vcombine.low %v742_v32, %v749_v36  ;;  %v320_v28 = vpop.xlane.xlu1 %319 }
  0xed   : > { %v484_v46 = vrot.slane %v293_v18, %v1735_v4  ;;  %v488_v47 = vrot.slane %v293_v18, %v1738_v5  ;;  %v765_v48 = vcombine.low %v756_v37, %v763_v40  ;;  %v781_v49 = vcombine.low %v460_v33, %v464_v34 }
  0xee   : > { %v782_v50 = vcombine.low %v468_v38, %v472_v41  ;;  %v783_v51 = vcombine.low %v476_v42, %v480_v43  ;;  %984 = vperm.xlu1 %1384, %v731_v44   ;;  %v772_v52 = vrot.slane %v764_v45, %v1741_v7  ;;  %v492_v54 = vrot.slane %v302_v39, %v1717_v62 }
  0xef   : > { %v784_v53 = vcombine.low %v484_v46, %v488_v47  ;;  %v496_v55 = vrot.slane %v302_v39, %v1720_v63  ;;  %v779_v56 = vrot.slane %v765_v48, %v1741_v7  ;;  %v791_v58 = vrot.slane %v781_v49, %v1741_v7 }
  0xf0   : > { %v798_v59 = vrot.slane %v782_v50, %v1741_v7  ;;  %v805_v61 = vrot.slane %v783_v51, %v1741_v7  ;;  %v500_v9 = vrot.slane %v302_v39, %v1723_v0  ;;  %v504_v10 = vrot.slane %v302_v39, %v1726_v1 }
  0xf1   : > { %v812_v8 = vrot.slane %v784_v53, %v1741_v7  ;;  %v508_v11 = vrot.slane %v302_v39, %v1729_v2  ;;  %v780_v12 = vcombine.low %v772_v52, %v779_v56  ;;  %v512_v14 = vrot.slane %v302_v39, %v1732_v3 }
  0xf2   : > { %v813_v13 = vcombine.low %v791_v58, %v798_v59  ;;  %v516_v15 = vrot.slane %v302_v39, %v1735_v4  ;;  %v520_v17 = vrot.slane %v302_v39, %v1738_v5  ;;  %v830_v18 = vcombine.low %v492_v54, %v496_v55 }
  0xf3   : > { %v814_v16 = vcombine.low %v805_v61, %v812_v8  ;;  %v831_v19 = vcombine.low %v500_v9, %v504_v10  ;;  %987 = vperm.xlu1 %1384, %v780_v12   ;;  %v832_v21 = vcombine.low %v508_v11, %v512_v14  ;;  %v524_v22 = vrot.slane %v311_v6, %v1717_v62 }
  0xf4   : > { %v821_v20 = vrot.slane %v813_v13, %v1741_v7  ;;  %v528_v23 = vrot.slane %v311_v6, %v1720_v63  ;;  %v833_v25 = vcombine.low %v516_v15, %v520_v17  ;;  %v840_v26 = vrot.slane %v830_v18, %v1741_v7  ;;  %v1079_v17 = vld [vmem:[%s1947_s1] sm:$0xff]  ;;  %v1080_v18 = vld [vmem:[%s1947_s1 + $0x8] sm:$0xff] }
  0xf5   : > { %v828_v24 = vrot.slane %v814_v16, %v1741_v7  ;;  %v847_v27 = vrot.slane %v831_v19, %v1741_v7  ;;  %v854_v29 = vrot.slane %v832_v21, %v1741_v7  ;;  %v532_v30 = vrot.slane %v311_v6, %v1723_v0  ;;  %v1081_v21 = vld [vmem:[%s1947_s1 + $0x10] sm:$0xff] }
  0xf6   : > { %v536_v31 = vrot.slane %v311_v6, %v1726_v1  ;;  %v540_v32 = vrot.slane %v311_v6, %v1729_v2  ;;  %v861_v34 = vrot.slane %v833_v25, %v1741_v7  ;;  %v544_v36 = vrot.slane %v311_v6, %v1732_v3  ;;  %v1084_v25 = vld [vmem:[%s1947_s1 + $0x28] sm:$0xff] }
  0xf7   : > { %v829_v33 = vcombine.low %v821_v20, %v828_v24  ;;  %v862_v35 = vcombine.low %v840_v26, %v847_v27  ;;  %v548_v37 = vrot.slane %v311_v6, %v1735_v4  ;;  %v552_v38 = vrot.slane %v311_v6, %v1738_v5  ;;  %v1085_v27 = vld [vmem:[%s1947_s1 + $0x30] sm:$0xff] }
  0xf8   : > { %v879_v39 = vcombine.low %v524_v22, %v528_v23  ;;  %v880_v40 = vcombine.low %v532_v30, %v536_v31  ;;  %v863_v41 = vcombine.low %v854_v29, %v861_v34  ;;  %v881_v43 = vcombine.low %v540_v32, %v544_v36  ;;  %v1082_v22 = vld [vmem:[%s1947_s1 + $0x18] sm:$0xff]  ;;  %v1083_v23 = vld [vmem:[%s1947_s1 + $0x20] sm:$0xff] }
  0xf9   : > { %990 = vperm.xlu1 %1384, %v829_v33   ;;  %v870_v42 = vrot.slane %v862_v35, %v1741_v7  ;;  %v556_v44 = vrot.slane %v320_v28, %v1717_v62  ;;  %v882_v45 = vcombine.low %v548_v37, %v552_v38  ;;  %v560_v48 = vrot.slane %v320_v28, %v1720_v63 }
  0xfa   : > { %v889_v46 = vrot.slane %v879_v39, %v1741_v7  ;;  %v896_v47 = vrot.slane %v880_v40, %v1741_v7  ;;  %v877_v49 = vrot.slane %v863_v41, %v1741_v7  ;;  %v903_v50 = vrot.slane %v881_v43, %v1741_v7 }
  0xfb   : > { %v564_v51 = vrot.slane %v320_v28, %v1723_v0  ;;  %v568_v52 = vrot.slane %v320_v28, %v1726_v1  ;;  %v910_v53 = vrot.slane %v882_v45, %v1741_v7  ;;  %v572_v62 = vrot.slane %v320_v28, %v1729_v2 }
  0xfc   : > { %v911_v54 = vcombine.low %v889_v46, %v896_v47  ;;  %v576_v55 = vrot.slane %v320_v28, %v1732_v3  ;;  %v878_v56 = vcombine.low %v870_v42, %v877_v49  ;;  %v580_v58 = vrot.slane %v320_v28, %v1735_v4 }
  0xfd   : > { %v584_v63 = vrot.slane %v320_v28, %v1738_v5  ;;  %v928_v59 = vcombine.low %v556_v44, %v560_v48  ;;  %v912_v61 = vcombine.low %v903_v50, %v910_v53  ;;  %v929_v8 = vcombine.low %v564_v51, %v568_v52  ;;  %v1086_v28 = vld [vmem:[%s1947_s1 + $0x38] sm:$0xff] }
  0xfe   : > { %v919_v6 = vrot.slane %v911_v54, %v1741_v7  ;;  %v930_v0 = vcombine.low %v572_v62, %v576_v55  ;;  %993 = vperm.xlu1 %1384, %v878_v56   ;;  %v1508_v16 = vmov 0.0   ;;  %v1303_v19 = vpack.c.bf16 %v1080_v18, %v1079_v17 }
  0xff   : > { %v931_v1 = vcombine.low %v580_v58, %v584_v63  ;;  %v938_v9 = vrot.slane %v928_v59, %v1741_v7  ;;  %v926_v10 = vrot.slane %v912_v61, %v1741_v7  ;;  %v945_v2 = vrot.slane %v929_v8, %v1741_v7  ;;  %183 = vst.msk [vmem:[#allocation2] sm:$0x1] %vm182_vm0, %v1508_v16 }
 0x100   : > { %v952_v3 = vrot.slane %v930_v0, %v1741_v7  ;;  %v1509_v20 = vmov 0.0|0.0   ;;  %v1306_v24 = vpack.c.bf16 %v1082_v22, %v1081_v21  ;;  %v1309_v26 = vpack.c.bf16 %v1084_v25, %v1083_v23  ;;  %1299 = vmatprep.mubr.msk.f32.mxu0 %vm1510_vm1, %v1508_v16 }
 0x101   : > { %v959_v4 = vrot.slane %v931_v1, %v1741_v7  ;;  %v927_v11 = vcombine.low %v919_v6, %v926_v10  ;;  %v960_v5 = vcombine.low %v938_v9, %v945_v2  ;;  %1302 = vmatprep.subr.bf16.mxu0 %v1509_v20  ;;  %v1312_v29 = vpack.c.bf16 %v1086_v28, %v1085_v27 }
 0x102   : > { %1304 = vmatpush3.bf16.msra.mxu0 %v1303_v19  ;;  %v1002_v33 = vand.u32 127, %v329_v57 }
 0x103   : > { %v961_v12 = vcombine.low %v952_v3, %v959_v4  ;;  %996 = vperm.xlu1 %1384, %v927_v11   ;;  %v968_v13 = vrot.slane %v960_v5, %v1741_v7  ;;  %1305 = vmatprep.subr.bf16.mxu0 %v1509_v20 }
 0x104   : > { %v1007_v35 = vadd.s32 4294967288, %v1002_v33  ;;  %v1014_v36 = vadd.s32 4294967280, %v1002_v33  ;;  %v1021_v37 = vadd.s32 4294967272, %v1002_v33  ;;  %v1028_v38 = vadd.s32 4294967264, %v1002_v33 }
 0x105   : > { %v975_v14 = vrot.slane %v961_v12, %v1741_v7  ;;  %v1035_v40 = vadd.s32 4294967256, %v1002_v33  ;;  %v1042_v43 = vadd.s32 4294967248, %v1002_v33  ;;  %v1005_v44 = vsub.s32 %v1002_v33, %v1714_v60 }
 0x106   : > { %1307 = vmatpush3.bf16.msra.mxu0 %v1306_v24  ;;  %v1010_v39 = vsub.s32 %v1007_v35, %v1714_v60  ;;  %v1017_v41 = vsub.s32 %v1014_v36, %v1714_v60  ;;  %v1024_v45 = vsub.s32 %v1021_v37, %v1714_v60  ;;  %v1031_v47 = vsub.s32 %v1028_v38, %v1714_v60  ;;  %v248_v3 = vld [vmem:[#allocation2] sm:$0x1] }
 0x107   : > { %v976_v15 = vcombine.low %v968_v13, %v975_v14  ;;  %1308 = vmatprep.subr.bf16.mxu0 %v1509_v20  ;;  %v1038_v48 = vsub.s32 %v1035_v40, %v1714_v60  ;;  %v1049_v49 = vadd.s32 4294967240, %v1002_v33  ;;  %v1045_v51 = vsub.s32 %v1042_v43, %v1714_v60 }
 0x109   : > { %999 = vperm.xlu1 %1384, %v976_v15   ;;  %v1052_v58 = vsub.s32 %v1049_v49, %v1714_v60 }
 0x10a   : > { %1310 = vmatpush3.bf16.msra.mxu0 %v1309_v26 }
 0x10b   : > { %1311 = vmatprep.subr.bf16.mxu0 %v1509_v20 }
 0x10e   : > { %1313 = vmatpush3.bf16.msra.mxu0 %v1312_v29 }
 0x163   : > { %v979_v46 = vpop.permute.xlu0 %978 }
 0x164   : > { %v1006_v52 = vrot.slane %v979_v46, %v1005_v44 }
 0x169   : > { %v982_v30 = vpop.permute.xlu1 %981 }
 0x16a   : > { %v1011_v57 = vrot.slane %v982_v30, %v1010_v39 }
 0x16c   : > { %v1013_v55 = vsel %vm1012_vm2, %v1011_v57, %v1006_v52 }
 0x16d   : > { %v985_v31 = vpop.permute.xlu1 %984 }
 0x16e   : > { %v1018_v50 = vrot.slane %v985_v31, %v1017_v41 }
 0x170   : > { %v1020_v63 = vsel %vm1019_vm3, %v1018_v50, %v1013_v55 }
 0x172   : > { %v988_v32 = vpop.permute.xlu1 %987 }
 0x173   : > { %v1025_v53 = vrot.slane %v988_v32, %v1024_v45 }
 0x175   : > { %v1027_v61 = vsel %vm1026_vm4, %v1025_v53, %v1020_v63 }
 0x178   : > { %v991_v34 = vpop.permute.xlu1 %990 }
 0x179   : > { %v1032_v62 = vrot.slane %v991_v34, %v1031_v47 }
 0x17b   : > { %v1034_v6 = vsel %vm1033_vm5, %v1032_v62, %v1027_v61 }
 0x17d   : > { %v994_v42 = vpop.permute.xlu1 %993 }
 0x17e   : > { %v1039_v56 = vrot.slane %v994_v42, %v1038_v48 }
 0x180   : > { %v1041_v0 = vsel %vm1040_vm6, %v1039_v56, %v1034_v6 }
 0x182   : > { %v997_v54 = vpop.permute.xlu1 %996 }
 0x183   : > { %v1046_v59 = vrot.slane %v997_v54, %v1045_v51 }
 0x185   : > { %v1048_v9 = vsel %vm1047_vm7, %v1046_v59, %v1041_v0 }
 0x188   : > { %v1000_v8 = vpop.permute.xlu1 %999 }
 0x189   : > { %v1053_v1 = vrot.slane %v1000_v8, %v1052_v58 }
 0x18b   : > { %v1055_v10 = vsel %vm1054_vm8, %v1053_v1, %v1048_v9 }
 0x18c   : > { %v1062_v2 = vrot.slane %v1055_v10, %v1741_v7 }
 0x18e   : > { %v1069_v4 = vrot.slane %v1062_v2, %v1741_v7 }
 0x190   : > { %v1071_v60 = vadd.f32 %v1069_v4, %v248_v3 }
 0x192   : > { %1073 = vst.msk [vmem:[#allocation2] sm:$0x1] %vm182_vm0, %v1071_v60 }
 0x199   : > { %v1077_v11 = vld [vmem:[#allocation2] sm:$0x1] }
 0x19a   : > { %v1078_v5 = vmul.f32 0.0009765625, %v1077_v11 }
 0x19c   : > { %1300 = vmatmul.mubr.msk.f32.vlgmr.msra.gmra.mrb[0].mxu0 %vm1087_vm9, %v1078_v5 }
 0x26f   : > { %v1157_v12 = vpop.f32.mrb[0].mxu0 }
 0x270   : > { %v1269_v13 = vmul.f32 -1.442695, %v1157_v12  ;;  %v1301_v14 = vpop.f32.mrb[1].mxu0 }
 0x272   : > { %1385 = vpow2.f32 %v1269_v13 }
 0x27c   : > { %v1386_v15 = vpop.eup %1385 }
 0x27d   : > { %v1164_v16 = vadd.f32 1.0, %v1386_v15 }
 0x27f   : > { %1387 = vrcp.f32 %v1164_v16 }
 0x289   : > { %v1388_v7 = vpop.eup %1387 }
 0x28a   : > { %1168 = vst.msk [vmem:[%s176_s21] sm:$0x1] %vm1167_vm10, %v1388_v7 }
 0x28b   : > { %1432 = shalt.err (!%p1429_p5)
}
 0x28c   : > { %s1433_s3 = scalar_lea.hbm %s1897_s6, 16  ;;  %s1437_s27 = scalar_lea.hbm %s1948_s2, 32 }
 0x28d   : > { %p1434_p4 = scmp.ne.s32.totalorder %s1897_s6, %s1433_s3  ;;  %p1438_p12 = scmp.lt.u32.totalorder %s1897_s6, %s1948_s2 }
 0x28e   : > { %p1439_p1 = scmp.lt.u32.totalorder %s1437_s27, %s1433_s3  ;;  %p1441_p8 = scmp.lt.u32.totalorder %s1433_s3, %s1897_s6 }
 0x28f   : > { %p1435_p7 = pnand %p1434_p4, %p1956_p9 }
 0x290   : > { %p1440_p3 = por %p1439_p1, %p1438_p12 }
 0x291   : > { %p1436_p10 = pneg %p1435_p7 }
 0x292   : > { %p1442_p11 = por %p1441_p8, %p1440_p3 }
 0x294   : > { %p1443_p0 = pnand %p1442_p11, %p1436_p10 }
 0x296   : > { %1446 = shalt.err (!%p1443_p0)
}
 0x297   : > { %1316 = dma.vmem_to_hbm [thread:$0]  (%p1956_p9), %s1899_s30, 16, %s1897_s6, %s1170_s16  }
 0x298 PF: > { %s1194_s7 = sand.u32 1, %s1481_s9   ;;  %p1957_p6 = scmp.ne.s32.totalorder %s1953_s24, 0 }
 0x299   : > { %p1958_p13 = scmp.ge.s32.totalorder %s1501_s14, 2  ;;  %s1195_s8 = scalar_lea.sflag [#allocation5], %s1194_s7 }
 0x29b   : > { %p1323_p2 = pnand %p1958_p13, %p1957_p6 }
 0x29d   : > { %1476 = dma.done.wait (!%p1323_p2), %s1195_s8, 16  }
 0x29e   : > { %1478 = vsyncadd (!%p1323_p2), %s1195_s8, 4294967280  ;;  %s18_s14 = sadd.s32 1, %s1501_s14   ;;  %s1959_s9 = smov %s1485_s10 }
 0x29f   : > { %p15_p5 = scmp.ge.s32.totalorder %s18_s14, 4   ;;  %s1960_s10 = smov %s1489_s11 }
 0x2a0   : > { %s1961_s11 = smov %s1583_s23  ;;  %s1962_s12 = smov %s1497_s13 }
 0x2a1   : > { %s1963_s13 = smov %s1965_s17  ;;  %17 = sbr.rel (!%p15_p5) target bundleno = 6 (0x6), region = 81 }
 0x2a8   :  { %1199 = vsyncpa [#allocation4], 1 }
 0x2a9   :  { %1201 = vsyncpa [#allocation4 + $0x1], 1 }
 0x2aa   :  { %1202 = vsyncpa [#allocation5], 1 }
 0x2ab   :  { %1204 = vsyncpa [#allocation5 + $0x1], 1 }

</bundles_post_ra>
